<compile_context>
chip_gen: v7x
topology: tpu7x:2x2x1
jax: 0.10.0
libtpu: 0.0.40
codegen_flags: <defaults>
</compile_context>

<pallas_src>
import itertools
import numpy as np
import jax
import jax.numpy as jnp
from jax.experimental import pallas as pl
from jax.experimental.pallas import tpu as pltpu


def _round_up(x, m):
    return ((x + m - 1) // m) * m


# ----------------------------- Pallas kernel --------------------------------

def _make_ctr_kernel(pairs, triples, num_fields):
    """pairs/triples are compile-time index tuples -> statically unrolled."""
    F = num_fields
    pairs = tuple(tuple(int(i) for i in p) for p in pairs)
    triples = tuple(tuple(int(i) for i in t) for t in triples)
    # Suffix-sum factoring is an exact identity only when the triple list is
    # the complete set of 3-combinations (which NetworkCTR_Sparse uses).
    use_suffix = (
        F >= 3
        and set(pairs) == set(itertools.combinations(range(F), 2))
        and set(triples) == set(itertools.combinations(range(F), 3))
    )

    def kernel(g2_ref, bias_ref, emb_ref, lin_ref, out_ref):
        # emb_ref : (F, Dp, TB)  field-major, batch lane-dense       (VMEM)
        # lin_ref : (1, TB)  precomputed per-row linear sum          (VMEM)
        # g2_ref  : (N2,) SMEM ; bias_ref : (1,) SMEM
        # out_ref : (1, TB)                                          (VMEM)
        e = [emb_ref[f].astype(jnp.float32) for f in range(F)]
        acc = jnp.zeros_like(e[0])                          # (Dp, TB) f32

        if use_suffix:
            # T[b] = sum_{c > b} e[c]; fold the ungated 3rd-order terms into
            # the gated pair loop: acc += e_a * e_b * (g_ab + T_b).
            T = [None] * F
            T[F - 2] = e[F - 1]
            for b in range(F - 3, 0, -1):
                T[b] = T[b + 1] + e[b + 1]
            for k, (a, b) in enumerate(pairs):
                prod = e[a] * e[b]
                if b == F - 1:                              # T_b == 0
                    acc = acc + prod * g2_ref[k]
                else:
                    acc = acc + prod * (g2_ref[k] + T[b])
        else:
            for k, (a, b) in enumerate(pairs):              # gated 2nd order
                acc = acc + (e[a] * e[b]) * g2_ref[k]
            for (a, b, c) in triples:                       # ungated 3rd order
                acc = acc + e[a] * e[b] * e[c]

        nasfm = jnp.sum(acc, axis=0, keepdims=True)         # (1, TB) sublane reduce
        out_ref[...] = jax.nn.sigmoid(lin_ref[...] + bias_ref[0] + nasfm)

    return kernel


def ctr_forward_pallas(emb_t, lin_sum, genotype_2nd, lin_bias, pairs, triples,
                       *, tile_batch=8192):
    """emb_t: (F, Dp, B_pad) lane-dense; lin_sum: (1, B_pad) -> sigmoid (1, B_pad)."""
    F, Dp, B_pad = emb_t.shape
    assert B_pad % 128 == 0 and Dp % 8 == 0

    # Large tile to amortize the ~0.35us per-grid-step overhead, capped so the
    # grid has >= 2 "parallel" steps whenever possible (v7x has 2 TensorCores).
    tb = max(128, (int(tile_batch) // 128) * 128)
    two_step_cap = max(128, _round_up((B_pad + 1) // 2, 128))
    TB = min(tb, B_pad, two_step_cap)
    grid = pl.cdiv(B_pad, TB)        # ragged last tile: reads padded, store masked

    g2 = jnp.reshape(genotype_2nd, (-1,)).astype(jnp.float32)   # (N2,)
    bias = jnp.reshape(lin_bias, (1,)).astype(jnp.float32)      # (1,)

    smem = pl.BlockSpec(memory_space=pltpu.MemorySpace.SMEM)
    # NOTE: pipeline_mode=pl.Buffered(3) on the embedding spec was considered
    # for v7x but skipped: the body is VALU-bound, DMA is already hidden.
    return pl.pallas_call(
        _make_ctr_kernel(pairs, triples, F),
        out_shape=jax.ShapeDtypeStruct((1, B_pad), jnp.float32),
        grid=(grid,),
        in_specs=[
            smem,                                                # genotype_2nd
            smem,                                                # linear bias
            pl.BlockSpec((F, Dp, TB), lambda i: (0, 0, i)),      # embeddings
            pl.BlockSpec((1, TB), lambda i: (0, i)),             # linear row-sum
        ],
        out_specs=pl.BlockSpec((1, TB), lambda i: (0, i)),
        compiler_params=pltpu.CompilerParams(
            dimension_semantics=("parallel",)),
    )(g2, bias, emb_t, lin_sum)


# ------------------------------ JAX glue -------------------------------------

def build_model(field_dims, embed_dim, key):
    total = int(sum(field_dims))
    k_emb, k_lin, k_b, k_g2, k_g3 = jax.random.split(key, 5)
    emb_table = jax.random.normal(k_emb, (total, embed_dim), jnp.float32) * 0.1
    lin_table = jax.random.normal(k_lin, (total, 1), jnp.float32) * 0.1
    lin_bias = jax.random.normal(k_b, (1,), jnp.float32) * 0.1

    F = len(field_dims)
    pairs = tuple(itertools.combinations(range(F), 2))     # fields_list[0]
    triples = tuple(itertools.combinations(range(F), 3))   # fields_list[1]

    genotype_2nd = jax.random.uniform(k_g2, (len(pairs), 1), jnp.float32)
    genotype_3rd = jax.random.uniform(k_g3, (len(triples), 1), jnp.float32)  # unused in fwd

    offsets = jnp.asarray(
        np.concatenate([[0], np.cumsum(field_dims)[:-1]]), jnp.int32)

    params = dict(emb_table=emb_table, lin_table=lin_table, lin_bias=lin_bias,
                  genotype_2nd=genotype_2nd, genotype_3rd=genotype_3rd,
                  offsets=offsets)
    return params, (pairs, triples)


def network_ctr_sparse_forward(params, fields_list, x, *,
                               input_dtype=jnp.bfloat16, tile_batch=8192):
    pairs, triples = fields_list
    B, F = x.shape
    D = params["emb_table"].shape[1]
    Dp = _round_up(D, 8)
    B_pad = _round_up(max(B, 1), 128)

    # Data-dependent gather stays in JAX glue, but it now writes straight into
    # the kernel's lane-dense (F, Dp, B_pad) layout (no (B,F,D) tensor, no
    # transpose pass, no big pad pass -- padding happens on the int32 idx).
    idx = x.astype(jnp.int32) + params["offsets"][None, :]        # (B, F)
    idx = jnp.pad(idx, ((0, B_pad - B), (0, 0)))                  # pad rows -> row 0

    table_T = jnp.pad(params["emb_table"].T.astype(input_dtype),
                      ((0, Dp - D), (0, 0)))                      # (Dp, total)
    emb_t = jnp.stack([jnp.take(table_T, idx[:, f], axis=1)
                       for f in range(F)], axis=0)                # (F, Dp, B_pad)

    # Per-row linear term precomputed here: stream (1, B_pad) instead of (F, TB).
    lin_vals = jnp.take(params["lin_table"][:, 0].astype(input_dtype),
                        idx, axis=0).astype(jnp.float32)          # (B_pad, F)
    lin_sum = jnp.sum(lin_vals, axis=1)[None, :]                  # (1, B_pad)

    out = ctr_forward_pallas(emb_t, lin_sum, params["genotype_2nd"],
                             params["lin_bias"], pairs, triples,
                             tile_batch=tile_batch)
    return out[0, :B]                                             # squeeze(1) -> (B,)


def reference_forward(params, fields_list, x, input_dtype=jnp.float32):
    idx = x + params["offsets"][None, :]
    e = params["emb_table"][idx].astype(input_dtype).astype(jnp.float32)
    linw = params["lin_table"][idx][:, :, 0].astype(input_dtype).astype(jnp.float32)
    pairs, triples = fields_list
    row = jnp.asarray([p[0] for p in pairs]); col = jnp.asarray([p[1] for p in pairs])
    f1 = jnp.asarray([t[0] for t in triples]); f2 = jnp.asarray([t[1] for t in triples])
    f3 = jnp.asarray([t[2] for t in triples])
    ip2 = e[:, row] * e[:, col]
    ip3 = e[:, f1] * e[:, f2] * e[:, f3]
    nasfm_2nd = jnp.sum(jnp.sum(ip2 * params["genotype_2nd"][None], axis=1),
                        axis=1, keepdims=True)
    nasfm_3rd = jnp.sum(jnp.sum(ip3, axis=1), axis=1, keepdims=True)
    lin = jnp.sum(linw, axis=1, keepdims=True) + params["lin_bias"][0]
    return jax.nn.sigmoid((lin + nasfm_2nd + nasfm_3rd)[:, 0])


# -------------------------------- main ---------------------------------------

if __name__ == "__main__":
    field_dims = [10, 12, 8, 6, 9, 7]   # 6 sparse fields
    embed_dim = 8

    key = jax.random.PRNGKey(0)
    k_params, k_x = jax.random.split(key)
    params, fields_list = build_model(field_dims, embed_dim, k_params)

    def make_x(batch, seed_key):
        cols = []
        for i, fd in enumerate(field_dims):
            cols.append(jax.random.randint(jax.random.fold_in(seed_key, i),
                                           (batch,), 0, fd, dtype=jnp.int32))
        return jnp.stack(cols, axis=1)                      # (B, F) int32

    # (1) f32 inputs, single tile (B=4 -> B_pad=128, grid=1) — tight check.
    x_small = make_x(4, k_x)
    out = jax.block_until_ready(
        network_ctr_sparse_forward(params, fields_list, x_small,
                                   input_dtype=jnp.float32))
    ref = jax.block_until_ready(reference_forward(params, fields_list, x_small))
    assert out.shape == (4,)
    np.testing.assert_allclose(np.asarray(out), np.asarray(ref),
                               rtol=1e-5, atol=1e-6)

    # (2) bf16 inputs, default tile -> TB capped to 256, grid=2 with a ragged
    #     last tile (B=260 -> B_pad=384): exercises partial-block masking.
    x_big = make_x(260, jax.random.fold_in(k_x, 999))
    out_b = jax.block_until_ready(
        network_ctr_sparse_forward(params, fields_list, x_big,
                                   input_dtype=jnp.bfloat16))
    ref_b = jax.block_until_ready(
        reference_forward(params, fields_list, x_big, input_dtype=jnp.bfloat16))
    assert out_b.shape == (260,)
    np.testing.assert_allclose(np.asarray(out_b), np.asarray(ref_b),
                               rtol=5e-4, atol=5e-5)

    # (3) f32 inputs, small explicit tile (TB=128, grid=3, even division).
    out_c = jax.block_until_ready(
        network_ctr_sparse_forward(params, fields_list, x_big,
                                   input_dtype=jnp.float32, tile_batch=128))
    ref_c = jax.block_until_ready(reference_forward(params, fields_list, x_big))
    np.testing.assert_allclose(np.asarray(out_c), np.asarray(ref_c),
                               rtol=1e-5, atol=1e-6)

    print("KERNEL_OK")
</pallas_src>

<mosaic_0001>
module attributes {stable_mosaic.version = 11 : i64} {
  func.func @kernel(%arg0: i32, %arg1: memref<15xf32, #tpu.memory_space<smem>>, %arg2: memref<1xf32, #tpu.memory_space<smem>>, %arg3: memref<6x8x128xf32, #tpu.memory_space<vmem>>, %arg4: memref<1x128xf32, #tpu.memory_space<vmem>>, %arg5: memref<1x128xf32, #tpu.memory_space<vmem>>) attributes {dimension_semantics = [#tpu.dimension_semantics<parallel>], iteration_bounds = array<i64: 1>, scalar_prefetch = 0 : i64, scratch_operands = 0 : i64, tpu.core_type = #tpu.core_type<tc>, window_params = [{transform_indices = @transform_0, window_bounds = array<i64: 15>}, {transform_indices = @transform_1, window_bounds = array<i64: 1>}, {transform_indices = @transform_2, window_bounds = array<i64: 6, 8, 128>}, {transform_indices = @transform_3, window_bounds = array<i64: 1, 128>}, {transform_indices = @transform_4, window_bounds = array<i64: 1, 128>}]} {
    %c0 = arith.constant 0 : index
    %c0_0 = arith.constant 0 : index
    %c0_1 = arith.constant 0 : index
    %0 = vector.load %arg3[%c0, %c0_0, %c0_1] : memref<6x8x128xf32, #tpu.memory_space<vmem>>, vector<1x8x128xf32>
    %1 = vector.shape_cast %0 : vector<1x8x128xf32> to vector<8x128xf32>
    %c1 = arith.constant 1 : index
    %c0_2 = arith.constant 0 : index
    %c0_3 = arith.constant 0 : index
    %2 = vector.load %arg3[%c1, %c0_2, %c0_3] : memref<6x8x128xf32, #tpu.memory_space<vmem>>, vector<1x8x128xf32>
    %3 = vector.shape_cast %2 : vector<1x8x128xf32> to vector<8x128xf32>
    %c2 = arith.constant 2 : index
    %c0_4 = arith.constant 0 : index
    %c0_5 = arith.constant 0 : index
    %4 = vector.load %arg3[%c2, %c0_4, %c0_5] : memref<6x8x128xf32, #tpu.memory_space<vmem>>, vector<1x8x128xf32>
    %5 = vector.shape_cast %4 : vector<1x8x128xf32> to vector<8x128xf32>
    %c3 = arith.constant 3 : index
    %c0_6 = arith.constant 0 : index
    %c0_7 = arith.constant 0 : index
    %6 = vector.load %arg3[%c3, %c0_6, %c0_7] : memref<6x8x128xf32, #tpu.memory_space<vmem>>, vector<1x8x128xf32>
    %7 = vector.shape_cast %6 : vector<1x8x128xf32> to vector<8x128xf32>
    %c4 = arith.constant 4 : index
    %c0_8 = arith.constant 0 : index
    %c0_9 = arith.constant 0 : index
    %8 = vector.load %arg3[%c4, %c0_8, %c0_9] : memref<6x8x128xf32, #tpu.memory_space<vmem>>, vector<1x8x128xf32>
    %9 = vector.shape_cast %8 : vector<1x8x128xf32> to vector<8x128xf32>
    %c5 = arith.constant 5 : index
    %c0_10 = arith.constant 0 : index
    %c0_11 = arith.constant 0 : index
    %10 = vector.load %arg3[%c5, %c0_10, %c0_11] : memref<6x8x128xf32, #tpu.memory_space<vmem>>, vector<1x8x128xf32>
    %11 = vector.shape_cast %10 : vector<1x8x128xf32> to vector<8x128xf32>
    %cst = arith.constant 0.000000e+00 : f32
    %12 = vector.broadcast %cst : f32 to vector<8x128xf32>
    %13 = arith.addf %11, %9 : vector<8x128xf32>
    %14 = arith.addf %13, %7 : vector<8x128xf32>
    %15 = arith.addf %14, %5 : vector<8x128xf32>
    %16 = arith.mulf %1, %3 : vector<8x128xf32>
    %c0_12 = arith.constant 0 : index
    %17 = memref.load %arg1[%c0_12] : memref<15xf32, #tpu.memory_space<smem>>
    %18 = vector.broadcast %17 : f32 to vector<8x128xf32>
    %19 = arith.addf %18, %15 : vector<8x128xf32>
    %20 = arith.mulf %16, %19 : vector<8x128xf32>
    %21 = arith.addf %12, %20 : vector<8x128xf32>
    %22 = arith.mulf %1, %5 : vector<8x128xf32>
    %c1_13 = arith.constant 1 : index
    %23 = memref.load %arg1[%c1_13] : memref<15xf32, #tpu.memory_space<smem>>
    %24 = vector.broadcast %23 : f32 to vector<8x128xf32>
    %25 = arith.addf %24, %14 : vector<8x128xf32>
    %26 = arith.mulf %22, %25 : vector<8x128xf32>
    %27 = arith.addf %21, %26 : vector<8x128xf32>
    %28 = arith.mulf %1, %7 : vector<8x128xf32>
    %c2_14 = arith.constant 2 : index
    %29 = memref.load %arg1[%c2_14] : memref<15xf32, #tpu.memory_space<smem>>
    %30 = vector.broadcast %29 : f32 to vector<8x128xf32>
    %31 = arith.addf %30, %13 : vector<8x128xf32>
    %32 = arith.mulf %28, %31 : vector<8x128xf32>
    %33 = arith.addf %27, %32 : vector<8x128xf32>
    %34 = arith.mulf %1, %9 : vector<8x128xf32>
    %c3_15 = arith.constant 3 : index
    %35 = memref.load %arg1[%c3_15] : memref<15xf32, #tpu.memory_space<smem>>
    %36 = vector.broadcast %35 : f32 to vector<8x128xf32>
    %37 = arith.addf %36, %11 : vector<8x128xf32>
    %38 = arith.mulf %34, %37 : vector<8x128xf32>
    %39 = arith.addf %33, %38 : vector<8x128xf32>
    %40 = arith.mulf %1, %11 : vector<8x128xf32>
    %c4_16 = arith.constant 4 : index
    %41 = memref.load %arg1[%c4_16] : memref<15xf32, #tpu.memory_space<smem>>
    %42 = vector.broadcast %41 : f32 to vector<8x128xf32>
    %43 = arith.mulf %40, %42 : vector<8x128xf32>
    %44 = arith.addf %39, %43 : vector<8x128xf32>
    %45 = arith.mulf %3, %5 : vector<8x128xf32>
    %c5_17 = arith.constant 5 : index
    %46 = memref.load %arg1[%c5_17] : memref<15xf32, #tpu.memory_space<smem>>
    %47 = vector.broadcast %46 : f32 to vector<8x128xf32>
    %48 = arith.addf %47, %14 : vector<8x128xf32>
    %49 = arith.mulf %45, %48 : vector<8x128xf32>
    %50 = arith.addf %44, %49 : vector<8x128xf32>
    %51 = arith.mulf %3, %7 : vector<8x128xf32>
    %c6 = arith.constant 6 : index
    %52 = memref.load %arg1[%c6] : memref<15xf32, #tpu.memory_space<smem>>
    %53 = vector.broadcast %52 : f32 to vector<8x128xf32>
    %54 = arith.addf %53, %13 : vector<8x128xf32>
    %55 = arith.mulf %51, %54 : vector<8x128xf32>
    %56 = arith.addf %50, %55 : vector<8x128xf32>
    %57 = arith.mulf %3, %9 : vector<8x128xf32>
    %c7 = arith.constant 7 : index
    %58 = memref.load %arg1[%c7] : memref<15xf32, #tpu.memory_space<smem>>
    %59 = vector.broadcast %58 : f32 to vector<8x128xf32>
    %60 = arith.addf %59, %11 : vector<8x128xf32>
    %61 = arith.mulf %57, %60 : vector<8x128xf32>
    %62 = arith.addf %56, %61 : vector<8x128xf32>
    %63 = arith.mulf %3, %11 : vector<8x128xf32>
    %c8 = arith.constant 8 : index
    %64 = memref.load %arg1[%c8] : memref<15xf32, #tpu.memory_space<smem>>
    %65 = vector.broadcast %64 : f32 to vector<8x128xf32>
    %66 = arith.mulf %63, %65 : vector<8x128xf32>
    %67 = arith.addf %62, %66 : vector<8x128xf32>
    %68 = arith.mulf %5, %7 : vector<8x128xf32>
    %c9 = arith.constant 9 : index
    %69 = memref.load %arg1[%c9] : memref<15xf32, #tpu.memory_space<smem>>
    %70 = vector.broadcast %69 : f32 to vector<8x128xf32>
    %71 = arith.addf %70, %13 : vector<8x128xf32>
    %72 = arith.mulf %68, %71 : vector<8x128xf32>
    %73 = arith.addf %67, %72 : vector<8x128xf32>
    %74 = arith.mulf %5, %9 : vector<8x128xf32>
    %c10 = arith.constant 10 : index
    %75 = memref.load %arg1[%c10] : memref<15xf32, #tpu.memory_space<smem>>
    %76 = vector.broadcast %75 : f32 to vector<8x128xf32>
    %77 = arith.addf %76, %11 : vector<8x128xf32>
    %78 = arith.mulf %74, %77 : vector<8x128xf32>
    %79 = arith.addf %73, %78 : vector<8x128xf32>
    %80 = arith.mulf %5, %11 : vector<8x128xf32>
    %c11 = arith.constant 11 : index
    %81 = memref.load %arg1[%c11] : memref<15xf32, #tpu.memory_space<smem>>
    %82 = vector.broadcast %81 : f32 to vector<8x128xf32>
    %83 = arith.mulf %80, %82 : vector<8x128xf32>
    %84 = arith.addf %79, %83 : vector<8x128xf32>
    %85 = arith.mulf %7, %9 : vector<8x128xf32>
    %c12 = arith.constant 12 : index
    %86 = memref.load %arg1[%c12] : memref<15xf32, #tpu.memory_space<smem>>
    %87 = vector.broadcast %86 : f32 to vector<8x128xf32>
    %88 = arith.addf %87, %11 : vector<8x128xf32>
    %89 = arith.mulf %85, %88 : vector<8x128xf32>
    %90 = arith.addf %84, %89 : vector<8x128xf32>
    %91 = arith.mulf %7, %11 : vector<8x128xf32>
    %c13 = arith.constant 13 : index
    %92 = memref.load %arg1[%c13] : memref<15xf32, #tpu.memory_space<smem>>
    %93 = vector.broadcast %92 : f32 to vector<8x128xf32>
    %94 = arith.mulf %91, %93 : vector<8x128xf32>
    %95 = arith.addf %90, %94 : vector<8x128xf32>
    %96 = arith.mulf %9, %11 : vector<8x128xf32>
    %c14 = arith.constant 14 : index
    %97 = memref.load %arg1[%c14] : memref<15xf32, #tpu.memory_space<smem>>
    %98 = vector.broadcast %97 : f32 to vector<8x128xf32>
    %99 = arith.mulf %96, %98 : vector<8x128xf32>
    %100 = arith.addf %95, %99 : vector<8x128xf32>
    %cst_18 = arith.constant dense<0.000000e+00> : vector<128xf32>
    %101 = vector.multi_reduction <add>, %100, %cst_18 [0] : vector<8x128xf32> to vector<128xf32>
    %102 = vector.shape_cast %101 : vector<128xf32> to vector<1x128xf32>
    %c0_19 = arith.constant 0 : index
    %c0_20 = arith.constant 0 : index
    %103 = vector.load %arg4[%c0_19, %c0_20] : memref<1x128xf32, #tpu.memory_space<vmem>>, vector<1x128xf32>
    %c0_21 = arith.constant 0 : index
    %104 = memref.load %arg2[%c0_21] : memref<1xf32, #tpu.memory_space<smem>>
    %105 = vector.broadcast %104 : f32 to vector<1x128xf32>
    %106 = arith.addf %103, %105 : vector<1x128xf32>
    %107 = arith.addf %106, %102 : vector<1x128xf32>
    %108 = arith.negf %107 : vector<1x128xf32>
    %109 = math.exp %108 : vector<1x128xf32>
    %cst_22 = arith.constant 1.000000e+00 : f32
    %110 = vector.broadcast %cst_22 : f32 to vector<1x128xf32>
    %111 = arith.addf %110, %109 : vector<1x128xf32>
    %112 = arith.divf %110, %111 : vector<1x128xf32>
    %c0_23 = arith.constant 0 : index
    %c0_24 = arith.constant 0 : index
    %113 = vector.load %arg5[%c0_23, %c0_24] : memref<1x128xf32, #tpu.memory_space<vmem>>, vector<1x128xf32>
    tpu.vector_store %arg5[%c0_23, %c0_24], %112 {strides = array<i32>} : memref<1x128xf32, #tpu.memory_space<vmem>>, vector<1x128xf32>,
    return
  }
  func.func @transform_0(%arg0: i32) -> i32 {
    %c0_i32 = arith.constant 0 : i32
    %c0_i32_0 = arith.constant 0 : i32
    return %c0_i32 : i32
  }
  func.func @transform_1(%arg0: i32) -> i32 {
    %c0_i32 = arith.constant 0 : i32
    %c0_i32_0 = arith.constant 0 : i32
    return %c0_i32 : i32
  }
  func.func @transform_2(%arg0: i32) -> (i32, i32, i32) {
    %c0_i32 = arith.constant 0 : i32
    %c0_i32_0 = arith.constant 0 : i32
    %c0_i32_1 = arith.constant 0 : i32
    return %c0_i32, %c0_i32_0, %arg0 : i32, i32, i32
  }
  func.func @transform_3(%arg0: i32) -> (i32, i32) {
    %c0_i32 = arith.constant 0 : i32
    %c0_i32_0 = arith.constant 0 : i32
    return %c0_i32, %arg0 : i32, i32
  }
  func.func @transform_4(%arg0: i32) -> (i32, i32) {
    %c0_i32 = arith.constant 0 : i32
    %c0_i32_0 = arith.constant 0 : i32
    return %c0_i32, %arg0 : i32, i32
  }
}

</mosaic_0001>

<bundles_post_ra>
// kernel: tpu_custom_call.1
= control target key start
LH: loop header
LB: loop body
LE: loop exit
PB: predicated region body
PF: predicated region fallthrough
CT: control target
= control target key end

     0   :  { %10 = vsyncpa [#allocation6], 0  ;;  %s376_s0 = inlined_call_operand.vmem [shape: f32[15], index: 0, kind: input, shape index: {}]   ;;  %s377_s1 = inlined_call_operand.<no memory space> [shape: f32[1], index: 1, kind: input, shape index: {}]   ;;  %s378_s2 = inlined_call_operand.hbm [shape: f32[6,8,128], index: 2, kind: input, shape index: {}]   ;;  %s379_s3 = inlined_call_operand.vmem [shape: f32[1,128], index: 3, kind: input, shape index: {}]   ;;  %s380_s4 = inlined_call_operand.hbm [shape: f32[1,128], index: 4, kind: output, shape index: {}]  }
   0x1   :  { %11 = vsyncpa [#allocation4], 0 }
   0x2   :  { %12 = vsyncpa [#allocation5], 0  ;;  %s19_s17 = sshll.u32 %s376_s0, 4  ;;  %s20_s17 = int_to_ptr.vmem [resolvable:$true] %s19_s17 }
   0x3   :  { %s203_s18 = scalar_lea.vmem %s20_s17, 16  ;;  %p208_p1 = scmp.lt.s32.totalorder %s20_s17, %s20_s17 }
   0x4   :  { %p204_p0 = scmp.ne.s32.totalorder %s20_s17, %s203_s18  ;;  %p209_p2 = scmp.lt.s32.totalorder %s203_s18, %s203_s18 }
   0x6   :  { %p210_p3 = por %p209_p2, %p208_p1 }
   0x8   :  { %p211_p4 = pnand %p210_p3, %p204_p0 }
   0xa   :  { %214 = shalt.err (!%p211_p4)
}
   0xb   :  { %s265_s19 = smov [#allocation3]   ;;  %s266_s20 = smov [#allocation7]  }
   0xc   :  { %22 = dma.vmem_to_smem %s20_s17, 16, %s265_s19, [#allocation6]  }
   0xd   :  { %s30_s21 = sshll.u32 %s266_s20, 4  ;;  %s215_s24 = scalar_lea.hbm %s378_s2, 768  ;;  %s31_s21 = int_to_ptr.vmem [resolvable:$true] %s30_s21 }
   0xe   :  { %p216_p5 = scmp.ne.s32.totalorder %s378_s2, %s215_s24  ;;  %p219_p6 = scmp.lt.u32.totalorder %s215_s24, %s378_s2 }
  0x10   :  { %p221_p7 = pnand %p219_p6, %p216_p5 }
  0x12   :  { %224 = shalt.err (!%p221_p7)
}
  0x13   :  { %s225_s28 = scalar_lea.vmem %s31_s21, 768  ;;  %p230_p9 = scmp.lt.s32.totalorder %s31_s21, %s31_s21 }
  0x14   :  { %p226_p8 = scmp.ne.s32.totalorder %s31_s21, %s225_s28  ;;  %p231_p10 = scmp.lt.s32.totalorder %s225_s28, %s225_s28 }
  0x16   :  { %p232_p11 = por %p231_p10, %p230_p9 }
  0x18   :  { %p233_p12 = pnand %p232_p11, %p226_p8 }
  0x1a   :  { %236 = shalt.err (!%p233_p12)
}
  0x1b   :  { %s267_s29 = smov 128   ;;  %s268_s30 = smov 8  }
  0x1c   :  { %36 = dma.hbm_to_vmem [thread:$0]  %s378_s2, 768, %s31_s21, [#allocation4], %s267_s29, %s267_s29, %s268_s30  }
  0x1d   :  { %259 = dma.done.wait [#allocation6], 16  }
  0x1e   :  { %260 = vsyncadd [#allocation6], 4294967280 }
  0x1f   :  { %261 = dma.done.wait [#allocation4], 768  }
  0x20   :  { %262 = vsyncadd [#allocation4], 4294966528 }
  0x21   :  { %45 = sfence }
  0x22   :  { %s61_s7 = sld [smem:[#allocation3]]  ;;  %v310_v0 = vld [vmem:[#allocation7 + $0x18] sm:$0xff]  ;;  %v312_v1 = vld [vmem:[#allocation7 + $0x20] sm:$0xff]  ;;  %v314_v2 = vld [vmem:[#allocation7 + $0x28] sm:$0xff]  ;;  %s179_s8 = sld [smem:[#allocation3 + $0x1]] }
  0x23   :  { %v46_v3 = vld [vmem:[#allocation7] sm:$0xff]  ;;  %v57_v4 = vadd.f32 %v314_v2, %v312_v1  ;;  %s180_s9 = sld [smem:[#allocation3 + $0x2]]  ;;  %s181_s10 = sld [smem:[#allocation3 + $0x3]]  ;;  %v48_v5 = vld [vmem:[#allocation7 + $0x8] sm:$0xff]  ;;  %v318_v6 = vld [vmem:[#allocation7 + $0x10] sm:$0xff]  ;;  %v129_v62 = vmul.f32 %v312_v1, %v310_v0 }
  0x24   :  { %s320_s2 = sld [smem:[#allocation3 + $0x4]]  ;;  %s183_s11 = sld [smem:[#allocation3 + $0x5]]  ;;  %v60_v9 = vmul.f32 %v48_v5, %v46_v3  ;;  %v66_v11 = vmul.f32 %v318_v6, %v46_v3  ;;  %v72_v13 = vmul.f32 %v310_v0, %v46_v3  ;;  %v78_v14 = vmul.f32 %v312_v1, %v46_v3 }
  0x25   :  { %v58_v7 = vadd.f32 %v57_v4, %v310_v0  ;;  %s323_s12 = sld [smem:[#allocation3 + $0x6]]  ;;  %s325_s13 = sld [smem:[#allocation3 + $0x7]]  ;;  %v84_v24 = vmul.f32 %v314_v2, %v46_v3  ;;  %v89_v30 = vmul.f32 %v318_v6, %v48_v5  ;;  %v95_v35 = vmul.f32 %v310_v0, %v48_v5 }
  0x26   :  { %s332_s14 = sld [smem:[#allocation3 + $0x9]]  ;;  %s186_s15 = sld [smem:[#allocation3 + $0x8]]  ;;  %v101_v39 = vmul.f32 %v312_v1, %v48_v5  ;;  %v107_v44 = vmul.f32 %v314_v2, %v48_v5  ;;  %v112_v49 = vmul.f32 %v310_v0, %v318_v6  ;;  %v118_v53 = vmul.f32 %v312_v1, %v318_v6 }
  0x27   :  { %v59_v8 = vadd.f32 %v58_v7, %v318_v6  ;;  %s188_s16 = sld [smem:[#allocation3 + $0xa]]  ;;  %s190_s17 = sld [smem:[#allocation3 + $0xc]]  ;;  %v124_v58 = vmul.f32 %v314_v2, %v318_v6  ;;  %v135_v5 = vmul.f32 %v314_v2, %v310_v0  ;;  %v151_v0 = vld [vmem:[%s379_s3] sm:$0x1] }
  0x28   :  { %v62_v10 = vstv %s61_s7  ;;  %v68_v12 = vstv %s179_s8  ;;  %s189_s18 = sld [smem:[#allocation3 + $0xb]]  ;;  %s191_s19 = sld [smem:[#allocation3 + $0xd]] }
  0x29   :  { %v63_v15 = vadd.f32 %v62_v10, %v59_v8  ;;  %v69_v16 = vadd.f32 %v68_v12, %v58_v7  ;;  %v74_v17 = vstv %s180_s9  ;;  %v80_v18 = vstv %s181_s10  ;;  %s192_s20 = sld [smem:[#allocation3 + $0xe]]  ;;  %s269_s25 = smov [#allocation8]  }
  0x2a   :  { %v75_v19 = vadd.f32 %v74_v17, %v57_v4  ;;  %v81_v20 = vadd.f32 %v80_v18, %v314_v2  ;;  %v91_v21 = vstv %s183_s11  ;;  %v86_v26 = vstv %s320_s2  ;;  %s169_s26 = sshll.u32 %s269_s25, 4  ;;  %s170_s26 = int_to_ptr.vmem [resolvable:$true] %s169_s26 }
  0x2b   :  { %v64_v22 = vmul.f32 %v63_v15, %v60_v9  ;;  %v70_v23 = vmul.f32 %v69_v16, %v66_v11  ;;  %v97_v27 = vstv %s323_s12  ;;  %v92_v31 = vadd.f32 %v91_v21, %v58_v7  ;;  %s237_s3 = scalar_lea.vmem %s170_s26, 16  ;;  %s241_s0 = scalar_lea.vmem %s170_s26, 32 }
  0x2c   :  { %v76_v25 = vmul.f32 %v75_v19, %v72_v13  ;;  %v82_v29 = vmul.f32 %v81_v20, %v78_v14  ;;  %v103_v32 = vstv %s325_s13  ;;  %v87_v34 = vmul.f32 %v86_v26, %v84_v24  ;;  %p238_p13 = scmp.ne.s32.totalorder %s170_s26, %s237_s3  ;;  %p242_p0 = scmp.lt.s32.totalorder %s170_s26, %s170_s26 }
  0x2d   :  { %v71_v28 = vadd.f32 %v70_v23, %v64_v22  ;;  %v98_v36 = vadd.f32 %v97_v27, %v57_v4  ;;  %v93_v38 = vmul.f32 %v92_v31, %v89_v30  ;;  %v104_v40 = vadd.f32 %v103_v32, %v314_v2  ;;  %p243_p1 = scmp.lt.s32.totalorder %s241_s0, %s237_s3 }
  0x2e   :  { %v114_v41 = vstv %s332_s14  ;;  %v109_v45 = vstv %s186_s15  ;;  %v120_v46 = vstv %s188_s16  ;;  %v131_v55 = vstv %s190_s17 }
  0x2f   :  { %v77_v33 = vadd.f32 %v76_v25, %v71_v28  ;;  %v99_v43 = vmul.f32 %v98_v36, %v95_v35  ;;  %v105_v48 = vmul.f32 %v104_v40, %v101_v39  ;;  %v115_v50 = vadd.f32 %v114_v41, %v57_v4  ;;  %p244_p2 = por %p243_p1, %p242_p0 }
  0x30   :  { %v110_v52 = vmul.f32 %v109_v45, %v107_v44  ;;  %v121_v54 = vadd.f32 %v120_v46, %v314_v2  ;;  %v126_v59 = vstv %s189_s18  ;;  %v132_v63 = vadd.f32 %v131_v55, %v314_v2 }
  0x31   :  { %v83_v37 = vadd.f32 %v82_v29, %v77_v33  ;;  %v116_v57 = vmul.f32 %v115_v50, %v112_v49  ;;  %v127_v4 = vmul.f32 %v126_v59, %v124_v58  ;;  %v137_v7 = vstv %s191_s19  ;;  %p245_p3 = pnand %p244_p2, %p238_p13 }
  0x32   :  { %v122_v61 = vmul.f32 %v121_v54, %v118_v53  ;;  %v133_v9 = vmul.f32 %v132_v63, %v129_v62  ;;  %v140_v10 = vmul.f32 %v314_v2, %v312_v1  ;;  %v142_v6 = vstv %s192_s20 }
  0x33   :  { %v88_v42 = vadd.f32 %v87_v34, %v83_v37  ;;  %v138_v12 = vmul.f32 %v137_v7, %v135_v5  ;;  %v153_v20 = vstv %s377_s1 }
  0x34   :  { %v143_v14 = vmul.f32 %v142_v6, %v140_v10  ;;  %v154_v2 = vadd.f32 %v153_v20, %v151_v0 }
  0x35   :  { %v94_v47 = vadd.f32 %v93_v38, %v88_v42 }
  0x37   :  { %v100_v51 = vadd.f32 %v99_v43, %v94_v47 }
  0x39   :  { %v106_v56 = vadd.f32 %v105_v48, %v100_v51 }
  0x3b   :  { %v111_v60 = vadd.f32 %v110_v52, %v106_v56 }
  0x3d   :  { %v117_v3 = vadd.f32 %v116_v57, %v111_v60 }
  0x3f   :  { %v123_v8 = vadd.f32 %v122_v61, %v117_v3 }
  0x41   :  { %v128_v11 = vadd.f32 %v127_v4, %v123_v8 }
  0x43   :  { %v134_v13 = vadd.f32 %v133_v9, %v128_v11 }
  0x45   :  { %v139_v15 = vadd.f32 %v138_v12, %v134_v13 }
  0x47   :  { %v144_v16 = vadd.f32 %v143_v14, %v139_v15 }
  0x49   :  { %v145_v17 = vrot.slane %v144_v16, 4 }
  0x4b   :  { %v146_v18 = vadd.f32 %v145_v17, %v144_v16 }
  0x4d   :  { %v147_v19 = vrot.slane %v146_v18, 2 }
  0x4f   :  { %v148_v21 = vadd.f32 %v147_v19, %v146_v18 }
  0x51   :  { %v149_v1 = vrot.slane %v148_v21, 1 }
  0x53   :  { %v150_v22 = vadd.f32 %v149_v1, %v148_v21 }
  0x55   :  { %v155_v23 = vadd.f32 %v154_v2, %v150_v22 }
  0x57   :  { %v193_v24 = vmul.f32 -1.442695, %v155_v23 }
  0x59   :  { %199 = vpow2.f32 %v193_v24 }
  0x63   :  { %v200_v25 = vpop.eup %199 }
  0x64   :  { %v159_v26 = vadd.f32 1.0, %v200_v25 }
  0x66   :  { %201 = vrcp.f32 %v159_v26 }
  0x70   :  { %v202_v27 = vpop.eup %201 }
  0x71   :  { %162 = vst [vmem:[#allocation8] sm:$0x1] %v202_v27 }
  0x72   :  { %248 = shalt.err (!%p245_p3)
}
  0x73   :  { %s249_s28 = scalar_lea.hbm %s380_s4, 16 }
  0x74   :  { %p250_p4 = scmp.ne.s32.totalorder %s380_s4, %s249_s28  ;;  %p253_p5 = scmp.lt.u32.totalorder %s249_s28, %s380_s4 }
  0x76   :  { %p255_p6 = pnand %p253_p5, %p250_p4 }
  0x78   :  { %258 = shalt.err (!%p255_p6)
}
  0x79   :  { %172 = dma.vmem_to_hbm [thread:$0]  %s170_s26, 16, %s380_s4, [#allocation5]  }
  0x7a   :  { %263 = dma.done.wait [#allocation5], 16  }
  0x7b   :  { %264 = vsyncadd [#allocation5], 4294967280 }
  0x7c   :  { %176 = vsyncpa [#allocation4], 1 }
  0x7d   :  { %177 = vsyncpa [#allocation5], 1 }
  0x7e   :  { %178 = vsyncpa [#allocation6], 1 }

</bundles_post_ra>
